<compile_context>
chip_gen: v7x
topology: tpu7x:2x2x1
jax: 0.10.0
libtpu: 0.0.40
codegen_flags: <defaults>
</compile_context>

<pallas_src>
import jax
import jax.numpy as jnp
from jax.experimental import pallas as pl
from jax.experimental.pallas import tpu as pltpu

LANE = 128
SUBLANE = 8
# (MAX_BLOCK_ROWS, 128) f32 = 1 MiB per input tile; 3 inputs x 2 pipeline
# buffers = 6 MiB total -> fits default scoped VMEM on v5e (16 MiB),
# v6e (32 MiB) and v7x (32 MiB) without raising vmem_limit_bytes.
MAX_BLOCK_ROWS = 2048


def _masked_smooth_l1_sum_kernel(pred_ref, targ_ref, mask_ref, sum_ref, acc_ref):
    i = pl.program_id(0)

    @pl.when(i == 0)
    def _():
        acc_ref[...] = jnp.zeros_like(acc_ref)

    d = pred_ref[...] - targ_ref[...]
    ad = jnp.abs(d)
    # torch default beta = 1.0:  0.5*d^2 if |d| < 1 else |d| - 0.5
    loss = jnp.where(ad < 1.0, 0.5 * d * d, ad - 0.5) * mask_ref[...]

    # Collapse the block to one (8, 128) vreg slab with major-axis (VPU-only)
    # adds, then accumulate elementwise into the persistent VMEM scratch.
    # No per-step cross-lane reduction, no scalar loop-carried dependency.
    block_rows = loss.shape[0]
    acc_ref[...] += loss.reshape(block_rows // SUBLANE, SUBLANE, LANE).sum(axis=0)

    # Single expensive cross-lane/sublane (XLU) reduction, exactly once.
    @pl.when(i == pl.num_programs(0) - 1)
    def _():
        sum_ref[...] = jnp.sum(acc_ref[...], keepdims=True)


def masked_smooth_l1_sum(pred_flat, target_flat, mask_flat):
    """Sum of smooth_l1(pred - target) * mask over flat f32 arrays of equal length."""
    total = pred_flat.shape[0]

    # Pad only to a multiple of one (8, 128) vreg slab, and only when actually
    # needed (the demo shape needs none -> no extra HBM copies from jnp.pad).
    pad = (-total) % (SUBLANE * LANE)
    if pad:
        pred_flat = jnp.pad(pred_flat, (0, pad))
        target_flat = jnp.pad(target_flat, (0, pad))
        mask_flat = jnp.pad(mask_flat, (0, pad))  # padded mask == 0
    rows = (total + pad) // LANE

    if rows <= MAX_BLOCK_ROWS:
        # Single block, grid of 1: no pipeline priming / per-step overhead.
        block_rows = rows
    else:
        block_rows = MAX_BLOCK_ROWS
        extra_rows = (-rows) % block_rows
        if extra_rows:
            extra = extra_rows * LANE
            pred_flat = jnp.pad(pred_flat, (0, extra))
            target_flat = jnp.pad(target_flat, (0, extra))
            mask_flat = jnp.pad(mask_flat, (0, extra))
            rows += extra_rows

    pred2 = pred_flat.reshape(rows, LANE)
    targ2 = target_flat.reshape(rows, LANE)
    mask2 = mask_flat.reshape(rows, LANE)

    spec = pl.BlockSpec((block_rows, LANE), lambda i: (i, 0))
    s = pl.pallas_call(
        _masked_smooth_l1_sum_kernel,
        out_shape=jax.ShapeDtypeStruct((1, 1), jnp.float32),
        grid_spec=pltpu.PrefetchScalarGridSpec(
            num_scalar_prefetch=0,
            grid=(rows // block_rows,),
            in_specs=[spec, spec, spec],
            out_specs=pl.BlockSpec((1, 1), lambda i: (0, 0)),
            scratch_shapes=[pltpu.VMEM((SUBLANE, LANE), jnp.float32)],
        ),
        compiler_params=pltpu.CompilerParams(
            dimension_semantics=("arbitrary",)),
    )(pred2, targ2, mask2)
    return s[0, 0]


def generate_delta_bboxes(anchors, gt_bbox, pos_iou_thresh=0.5):
    # TODO(synk): generate_delta_bboxes is not defined in the reference source;
    # implemented the standard per-anchor RPN delta encoding + IoU>thr positive mask.
    ax1, ay1, ax2, ay2 = anchors[:, 0], anchors[:, 1], anchors[:, 2], anchors[:, 3]
    gx1, gy1, gx2, gy2 = gt_bbox[:, 0], gt_bbox[:, 1], gt_bbox[:, 2], gt_bbox[:, 3]
    aw, ah = ax2 - ax1, ay2 - ay1
    gw, gh = gx2 - gx1, gy2 - gy1
    acx, acy = ax1 + 0.5 * aw, ay1 + 0.5 * ah
    gcx, gcy = gx1 + 0.5 * gw, gy1 + 0.5 * gh

    tx = (gcx - acx) / aw
    ty = (gcy - acy) / ah
    tw = jnp.log(gw / aw)
    th = jnp.log(gh / ah)
    delta = jnp.stack([tx, ty, tw, th], axis=1)

    ix1 = jnp.maximum(ax1, gx1)
    iy1 = jnp.maximum(ay1, gy1)
    ix2 = jnp.minimum(ax2, gx2)
    iy2 = jnp.minimum(ay2, gy2)
    inter = jnp.maximum(ix2 - ix1, 0.0) * jnp.maximum(iy2 - iy1, 0.0)
    union = aw * ah + gw * gh - inter
    iou = inter / jnp.maximum(union, 1e-6)
    mask = jnp.broadcast_to((iou > pos_iou_thresh)[:, None], delta.shape)
    return delta, mask


def smooth_l1_loss_forward(pred_bbox, gt_bbox, anchors):
    """Mirrors SmoothL1Loss.forward (mean smooth-L1 over mask-selected elements)."""
    delta_bbox, mask = generate_delta_bboxes(anchors, gt_bbox)
    # Note: like torch.masked_select's broadcasting, this is only well-defined
    # when pred_bbox.reshape(-1, 4) has the same row count as mask (batch == 1).
    pred = pred_bbox.reshape(-1, 4).astype(jnp.float32)
    m = mask.astype(jnp.float32)

    loss_sum = masked_smooth_l1_sum(pred.reshape(-1),
                                    delta_bbox.astype(jnp.float32).reshape(-1),
                                    m.reshape(-1))
    # Denominator is fully determined by the mask; a plain-JAX reduce here
    # removes one reduction + one output stream from the kernel hot loop.
    cnt = jnp.sum(m)
    # Guard the empty-mask case (torch would produce NaN here).
    return jnp.where(cnt > 0, loss_sum / cnt, 0.0)


def _reference_loss(pred_bbox, gt_bbox, anchors):
    # Plain-JAX reference of the same semantics for a sanity check.
    delta, mask = generate_delta_bboxes(anchors, gt_bbox)
    pred = pred_bbox.reshape(-1, 4)
    d = pred - delta
    ad = jnp.abs(d)
    loss = jnp.where(ad < 1.0, 0.5 * d * d, ad - 0.5)
    m = mask.astype(jnp.float32)
    return jnp.sum(loss * m) / jnp.sum(m)


if __name__ == "__main__":
    key = jax.random.PRNGKey(0)
    k1, k2 = jax.random.split(key)

    # Build a deterministic 16x16 grid of anchors at 2 sizes -> N = 512 anchors.
    gs, stride = 16, 16.0
    cy, cx = jnp.meshgrid(jnp.arange(gs, dtype=jnp.float32),
                          jnp.arange(gs, dtype=jnp.float32), indexing="ij")
    cx = (cx.reshape(-1) + 0.5) * stride
    cy = (cy.reshape(-1) + 0.5) * stride
    anchors_list = []
    for size in (16.0, 24.0):
        half = size / 2.0
        anchors_list.append(jnp.stack([cx - half, cy - half, cx + half, cy + half], axis=1))
    anchors = jnp.concatenate(anchors_list, axis=0)          # (512, 4)
    N = anchors.shape[0]

    # Ground-truth boxes: anchors jittered by <= 2 px (keeps IoU > 0.5 -> positives).
    jitter = jax.random.uniform(k1, (N, 4), minval=-2.0, maxval=2.0)
    gt_bbox = anchors + jitter                               # (512, 4)

    # Predicted regression deltas.
    pred_bbox = jax.random.normal(k2, (1, N, 4), dtype=jnp.float32)  # (B=1, N, 4)

    out = smooth_l1_loss_forward(pred_bbox, gt_bbox, anchors)
    out = jax.block_until_ready(out)

    ref = _reference_loss(pred_bbox, gt_bbox, anchors)
    assert jnp.allclose(out, ref, rtol=1e-5, atol=1e-5), (out, ref)
    print("KERNEL_OK")
</pallas_src>

<mosaic_0001>
module attributes {stable_mosaic.version = 11 : i64} {
  func.func @_masked_smooth_l1_sum_kernel(%arg0: i32, %arg1: memref<16x128xf32, #tpu.memory_space<vmem>>, %arg2: memref<16x128xf32, #tpu.memory_space<vmem>>, %arg3: memref<16x128xf32, #tpu.memory_space<vmem>>, %arg4: memref<1x1xf32, #tpu.memory_space<vmem>>, %arg5: memref<8x128xf32, #tpu.memory_space<vmem>>) attributes {dimension_semantics = [#tpu.dimension_semantics<arbitrary>], iteration_bounds = array<i64: 1>, scalar_prefetch = 0 : i64, scratch_operands = 1 : i64, tpu.core_type = #tpu.core_type<tc>, window_params = [{transform_indices = @transform_0, window_bounds = array<i64: 16, 128>}, {transform_indices = @transform_1, window_bounds = array<i64: 16, 128>}, {transform_indices = @transform_2, window_bounds = array<i64: 16, 128>}, {pipeline_mode = #tpu.pipeline_mode<synchronous>, transform_indices = @transform_3, window_bounds = array<i64: 1, 1>}]} {
    %c0_i32 = arith.constant 0 : i32
    %0 = arith.cmpi eq, %arg0, %c0_i32 : i32
    %1 = arith.extui %0 : i1 to i32
    %c0_i32_0 = arith.constant 0 : i32
    %2 = arith.cmpi ne, %1, %c0_i32_0 : i32
    scf.if %2 {
      %cst_15 = arith.constant 0.000000e+00 : f32
      %25 = vector.broadcast %cst_15 : f32 to vector<8x128xf32>
      %c0_16 = arith.constant 0 : index
      %c0_17 = arith.constant 0 : index
      %26 = vector.load %arg5[%c0_16, %c0_17] : memref<8x128xf32, #tpu.memory_space<vmem>>, vector<8x128xf32>
      tpu.vector_store %arg5[%c0_16, %c0_17], %25 {strides = array<i32>} : memref<8x128xf32, #tpu.memory_space<vmem>>, vector<8x128xf32>,
    } else {
    }
    %c0 = arith.constant 0 : index
    %c0_1 = arith.constant 0 : index
    %3 = vector.load %arg1[%c0, %c0_1] : memref<16x128xf32, #tpu.memory_space<vmem>>, vector<16x128xf32>
    %c0_2 = arith.constant 0 : index
    %c0_3 = arith.constant 0 : index
    %4 = vector.load %arg2[%c0_2, %c0_3] : memref<16x128xf32, #tpu.memory_space<vmem>>, vector<16x128xf32>
    %5 = arith.subf %3, %4 : vector<16x128xf32>
    %6 = math.absf %5 : vector<16x128xf32>
    %cst = arith.constant 1.000000e+00 : f32
    %7 = vector.broadcast %cst : f32 to vector<16x128xf32>
    %8 = arith.cmpf olt, %6, %7 : vector<16x128xf32>
    %cst_4 = arith.constant 5.000000e-01 : f32
    %9 = vector.broadcast %cst_4 : f32 to vector<16x128xf32>
    %10 = arith.mulf %9, %5 : vector<16x128xf32>
    %11 = arith.mulf %10, %5 : vector<16x128xf32>
    %cst_5 = arith.constant 5.000000e-01 : f32
    %12 = vector.broadcast %cst_5 : f32 to vector<16x128xf32>
    %13 = arith.subf %6, %12 : vector<16x128xf32>
    %14 = arith.select %8, %11, %13 : vector<16x128xi1>, vector<16x128xf32>
    %c0_6 = arith.constant 0 : index
    %c0_7 = arith.constant 0 : index
    %15 = vector.load %arg3[%c0_6, %c0_7] : memref<16x128xf32, #tpu.memory_space<vmem>>, vector<16x128xf32>
    %16 = arith.mulf %14, %15 : vector<16x128xf32>
    %c0_8 = arith.constant 0 : index
    %c0_9 = arith.constant 0 : index
    %17 = vector.load %arg5[%c0_8, %c0_9] : memref<8x128xf32, #tpu.memory_space<vmem>>, vector<8x128xf32>
    %18 = vector.shape_cast %16 : vector<16x128xf32> to vector<2x8x128xf32>
    %cst_10 = arith.constant dense<0.000000e+00> : vector<8x128xf32>
    %19 = vector.multi_reduction <add>, %18, %cst_10 [0] : vector<2x8x128xf32> to vector<8x128xf32>
    %20 = arith.addf %17, %19 : vector<8x128xf32>
    %c0_11 = arith.constant 0 : index
    %c0_12 = arith.constant 0 : index
    %21 = vector.load %arg5[%c0_11, %c0_12] : memref<8x128xf32, #tpu.memory_space<vmem>>, vector<8x128xf32>
    tpu.vector_store %arg5[%c0_11, %c0_12], %20 {strides = array<i32>} : memref<8x128xf32, #tpu.memory_space<vmem>>, vector<8x128xf32>,
    %c0_i32_13 = arith.constant 0 : i32
    %22 = arith.cmpi eq, %arg0, %c0_i32_13 : i32
    %23 = arith.extui %22 : i1 to i32
    %c0_i32_14 = arith.constant 0 : i32
    %24 = arith.cmpi ne, %23, %c0_i32_14 : i32
    scf.if %24 {
      %c0_15 = arith.constant 0 : index
      %c0_16 = arith.constant 0 : index
      %25 = vector.load %arg5[%c0_15, %c0_16] : memref<8x128xf32, #tpu.memory_space<vmem>>, vector<8x128xf32>
      %26 = vector.shape_cast %25 : vector<8x128xf32> to vector<1x8x128xf32>
      %cst_17 = arith.constant dense<0.000000e+00> : vector<1xf32>
      %27 = vector.multi_reduction <add>, %26, %cst_17 [1, 2] : vector<1x8x128xf32> to vector<1xf32>
      %28 = vector.shape_cast %27 : vector<1xf32> to vector<1x1x1xf32>
      %29 = vector.extract %28[0, 0, 0] : f32 from vector<1x1x1xf32>
      %30 = vector.broadcast %29 : f32 to vector<1x1xf32>
      %c0_18 = arith.constant 0 : index
      %c0_19 = arith.constant 0 : index
      %31 = vector.load %arg4[%c0_18, %c0_19] : memref<1x1xf32, #tpu.memory_space<vmem>>, vector<1x1xf32>
      tpu.vector_store %arg4[%c0_18, %c0_19], %30 {strides = array<i32>} : memref<1x1xf32, #tpu.memory_space<vmem>>, vector<1x1xf32>,
    } else {
    }
    return
  }
  func.func @transform_0(%arg0: i32) -> (i32, i32) {
    %c0_i32 = arith.constant 0 : i32
    %c0_i32_0 = arith.constant 0 : i32
    return %arg0, %c0_i32 : i32, i32
  }
  func.func @transform_1(%arg0: i32) -> (i32, i32) {
    %c0_i32 = arith.constant 0 : i32
    %c0_i32_0 = arith.constant 0 : i32
    return %arg0, %c0_i32 : i32, i32
  }
  func.func @transform_2(%arg0: i32) -> (i32, i32) {
    %c0_i32 = arith.constant 0 : i32
    %c0_i32_0 = arith.constant 0 : i32
    return %arg0, %c0_i32 : i32, i32
  }
  func.func @transform_3(%arg0: i32) -> (i32, i32) {
    %c0_i32 = arith.constant 0 : i32
    %c0_i32_0 = arith.constant 0 : i32
    %c0_i32_1 = arith.constant 0 : i32
    return %c0_i32, %c0_i32_0 : i32, i32
  }
}

</mosaic_0001>

<bundles_post_ra>
// kernel: tpu_custom_call.1
= control target key start
LH: loop header
LB: loop body
LE: loop exit
PB: predicated region body
PF: predicated region fallthrough
CT: control target
= control target key end

     0   :  { %8 = vsyncpa [#allocation4], 0  ;;  %s313_s0 = inlined_call_operand.hbm [shape: f32[16,128], index: 0, kind: input, shape index: {}]   ;;  %s314_s1 = inlined_call_operand.hbm [shape: f32[16,128], index: 1, kind: input, shape index: {}]   ;;  %s315_s2 = inlined_call_operand.hbm [shape: f32[16,128], index: 2, kind: input, shape index: {}]   ;;  %s316_s3 = inlined_call_operand.hbm [shape: f32[1,1], index: 3, kind: output, shape index: {}]  }
   0x1   :  { %9 = vsyncpa [#allocation7], 0 }
   0x2   :  { %10 = vsyncpa [#allocation5], 0  ;;  %s223_s12 = smov [#allocation6]   ;;  %s224_s14 = smov [#allocation3]  }
   0x3   :  { %s28_s13 = sshll.u32 %s223_s12, 4  ;;  %s16_s15 = sshll.u32 %s224_s14, 4  ;;  %s29_s13 = int_to_ptr.vmem [resolvable:$true] %s28_s13  ;;  %s249_s15 = int_to_ptr.vmem [resolvable:$true] %s16_s15 }
   0x4   :  { %s129_s18 = scalar_lea.hbm %s314_s1, 256 }
   0x5   :  { %p130_p0 = scmp.ne.s32.totalorder %s314_s1, %s129_s18  ;;  %p133_p1 = scmp.lt.u32.totalorder %s129_s18, %s314_s1 }
   0x7   :  { %p135_p2 = pnand %p133_p1, %p130_p0 }
   0x9   :  { %138 = shalt.err (!%p135_p2)
}
   0xa   :  { %s139_s23 = scalar_lea.vmem %s29_s13, 256  ;;  %p144_p4 = scmp.lt.s32.totalorder %s29_s13, %s29_s13 }
   0xb   :  { %p140_p3 = scmp.ne.s32.totalorder %s29_s13, %s139_s23  ;;  %p145_p5 = scmp.lt.s32.totalorder %s139_s23, %s139_s23 }
   0xd   :  { %p146_p6 = por %p145_p5, %p144_p4 }
   0xf   :  { %p147_p7 = pnand %p146_p6, %p140_p3 }
  0x11   :  { %150 = shalt.err (!%p147_p7)
}
  0x12   :  { %s225_s24 = smov 128   ;;  %s226_s25 = smov 8  }
  0x13   :  { %34 = dma.hbm_to_vmem [thread:$0]  %s314_s1, 256, %s29_s13, [#allocation7], %s225_s24, %s225_s24, %s226_s25  }
  0x14   :  { %s151_s30 = scalar_lea.hbm %s313_s0, 256 }
  0x15   :  { %p152_p8 = scmp.ne.s32.totalorder %s313_s0, %s151_s30  ;;  %p155_p9 = scmp.lt.u32.totalorder %s151_s30, %s313_s0 }
  0x17   :  { %p157_p10 = pnand %p155_p9, %p152_p8 }
  0x19   :  { %160 = shalt.err (!%p157_p10)
}
  0x1a   :  { %s161_s8 = scalar_lea.vmem %s249_s15, 256  ;;  %p166_p12 = scmp.lt.s32.totalorder %s249_s15, %s249_s15 }
  0x1b   :  { %p162_p11 = scmp.ne.s32.totalorder %s249_s15, %s161_s8  ;;  %p167_p13 = scmp.lt.s32.totalorder %s161_s8, %s161_s8 }
  0x1d   :  { %p168_p0 = por %p167_p13, %p166_p12 }
  0x1f   :  { %p169_p1 = pnand %p168_p0, %p162_p11 }
  0x21   :  { %172 = shalt.err (!%p169_p1)
}
  0x22   :  { %22 = dma.hbm_to_vmem [thread:$0]  %s313_s0, 256, %s249_s15, [#allocation4], %s225_s24, %s225_s24, %s226_s25  }
  0x23   :  { %s227_s10 = smov [#allocation8]   ;;  %s173_s14 = scalar_lea.hbm %s315_s2, 256 }
  0x24   :  { %s40_s11 = sshll.u32 %s227_s10, 4  ;;  %p174_p2 = scmp.ne.s32.totalorder %s315_s2, %s173_s14  ;;  %s41_s11 = int_to_ptr.vmem [resolvable:$true] %s40_s11 }
  0x25   :  { %p177_p3 = scmp.lt.u32.totalorder %s173_s14, %s315_s2 }
  0x27   :  { %p179_p4 = pnand %p177_p3, %p174_p2 }
  0x29   :  { %182 = shalt.err (!%p179_p4)
}
  0x2a   :  { %s183_s20 = scalar_lea.vmem %s41_s11, 256  ;;  %p188_p6 = scmp.lt.s32.totalorder %s41_s11, %s41_s11 }
  0x2b   :  { %p184_p5 = scmp.ne.s32.totalorder %s41_s11, %s183_s20  ;;  %p189_p7 = scmp.lt.s32.totalorder %s183_s20, %s183_s20 }
  0x2d   :  { %p190_p8 = por %p189_p7, %p188_p6 }
  0x2f   :  { %p191_p9 = pnand %p190_p8, %p184_p5 }
  0x31   :  { %194 = shalt.err (!%p191_p9)
}
  0x32   :  { %46 = dma.hbm_to_vmem [thread:$0]  %s315_s2, 256, %s41_s11, [#allocation7], %s225_s24, %s225_s24, %s226_s25  }
  0x33   :  { %217 = dma.done.wait [#allocation4], 256  }
  0x34   :  { %218 = vsyncadd [#allocation4], 4294967040 }
  0x35   :  { %219 = dma.done.wait [#allocation7], 512  }
  0x36   :  { %220 = vsyncadd [#allocation7], 4294966784  ;;  %v61_v0 = vld [vmem:[#allocation3] sm:$0xff]  ;;  %v62_v1 = vld [vmem:[#allocation3 + $0x8] sm:$0xff]  ;;  %s228_s2 = smov [#allocation9]   ;;  %vm101_vm2 = vcmask 0  }
  0x37   :  { %v63_v2 = vld [vmem:[#allocation6] sm:$0xff]  ;;  %v64_v3 = vld [vmem:[#allocation6 + $0x8] sm:$0xff]  ;;  %v79_v12 = vld [vmem:[#allocation8] sm:$0xff]  ;;  %s109_s21 = sshll.u32 %s228_s2, 4  ;;  %s110_s21 = int_to_ptr.vmem [resolvable:$true] %s109_s21 }
  0x38   :  { %v65_v4 = vsub.f32 %v61_v0, %v63_v2  ;;  %v66_v5 = vsub.f32 %v62_v1, %v64_v3  ;;  %v80_v15 = vld [vmem:[#allocation8 + $0x8] sm:$0xff]  ;;  %s195_s23 = scalar_lea.vmem %s110_s21, 16  ;;  %s199_s24 = scalar_lea.vmem %s110_s21, 32 }
  0x39   :  { %p196_p10 = scmp.ne.s32.totalorder %s110_s21, %s195_s23  ;;  %p200_p11 = scmp.lt.s32.totalorder %s110_s21, %s110_s21 }
  0x3a   :  { %v67_v6 = vand.u32 2147483647, %v65_v4  ;;  %v71_v7 = vmul.f32 0.5, %v65_v4  ;;  %v68_v8 = vand.u32 2147483647, %v66_v5  ;;  %v72_v9 = vmul.f32 0.5, %v66_v5  ;;  %p201_p12 = scmp.lt.s32.totalorder %s199_s24, %s195_s23 }
  0x3c   :  { %vm69_vm0 = vcmp.lt.f32.partialorder %v67_v6, 1.0  ;;  %v73_v10 = vmul.f32 %v71_v7, %v65_v4  ;;  %v119_v11 = vadd.f32 -0.5, %v67_v6  ;;  %vm70_vm1 = vcmp.lt.f32.partialorder %v68_v8, 1.0  ;;  %p202_p13 = por %p201_p12, %p200_p11 }
  0x3d   :  { %v74_v13 = vmul.f32 %v72_v9, %v66_v5  ;;  %v120_v14 = vadd.f32 -0.5, %v68_v8 }
  0x3e   :  { %v77_v16 = vsel %vm69_vm0, %v73_v10, %v119_v11  ;;  %p203_p0 = pnand %p202_p13, %p196_p10 }
  0x3f   :  { %v78_v17 = vsel %vm70_vm1, %v74_v13, %v120_v14  ;;  %v81_v18 = vmul.f32 %v79_v12, %v77_v16 }
  0x40   :  { %v82_v19 = vmul.f32 %v80_v15, %v78_v17 }
  0x42   :  { %v84_v20 = vadd.f32 %v82_v19, %v81_v18 }
  0x44   :  { %91 = vadd.xlane.f32.xlu0 %v84_v20 }
  0xd1   :  { %v92_v21 = vpop.xlane.xlu0 %91 }
  0xd2   :  { %v93_v22 = vrot.slane %v92_v21, 4 }
  0xd4   :  { %v94_v23 = vadd.f32 %v93_v22, %v92_v21 }
  0xd6   :  { %v95_v24 = vrot.slane %v94_v23, 2 }
  0xd8   :  { %v96_v25 = vadd.f32 %v95_v24, %v94_v23 }
  0xda   :  { %v97_v26 = vrot.slane %v96_v25, 1 }
  0xdc   :  { %v98_v27 = vadd.f32 %v97_v26, %v96_v25 }
  0xde   :  { %121 = vpush %v98_v27 }
 0x10f   :  { %s122_s22 = spop %121 }
 0x110   :  { %v100_v28 = vstv %s122_s22 }
 0x111   :  { %102 = vst.msk [vmem:[#allocation9] sm:$0x1] %vm101_vm2, %v100_v28 }
 0x112   :  { %206 = shalt.err (!%p203_p0)
}
 0x113   :  { %s207_s27 = scalar_lea.hbm %s316_s3, 16 }
 0x114   :  { %p208_p1 = scmp.ne.s32.totalorder %s316_s3, %s207_s27  ;;  %p211_p2 = scmp.lt.u32.totalorder %s207_s27, %s316_s3 }
 0x116   :  { %p213_p3 = pnand %p211_p2, %p208_p1 }
 0x118   :  { %216 = shalt.err (!%p213_p3)
}
 0x119   :  { %112 = dma.vmem_to_hbm [thread:$0]  %s110_s21, 16, %s316_s3, [#allocation5]  }
 0x11a   :  { %221 = dma.done.wait [#allocation5], 16  }
 0x11b   :  { %222 = vsyncadd [#allocation5], 4294967280 }
 0x11c   :  { %116 = vsyncpa [#allocation4], 1 }
 0x11d   :  { %117 = vsyncpa [#allocation7], 1 }
 0x11e   :  { %118 = vsyncpa [#allocation5], 1 }

</bundles_post_ra>
